<compile_context>
chip_gen: v5e
topology: v5e:2x2
jax: 0.10.0
libtpu: 0.0.40
codegen_flags: <defaults>
</compile_context>

<pallas_src>
import jax
import jax.numpy as jnp
from jax.experimental import pallas as pl
from jax.experimental.pallas import tpu as pltpu

_LANE = 128
_TARGET_BLOCK_BYTES = 4 * 1024 * 1024   # ~4 MiB input block -> ~16 MiB double-buffered in+out
_MIN_BLOCKS = 8                          # keep >= 8 programs so both v7x TCs get work
_VMEM_LIMIT_BYTES = 32 * 1024 * 1024     # raise v5e's 16 MiB scoped default; fits all gens
_SMALL_INPUT_ELEMS = 1 << 20             # below ~1M elems, fused jnp beats Pallas launch cost


def _round_up(x, m):
    return -(-x // m) * m


def _poly_kernel(coef_ref, x_ref, o_ref):
    # coef_ref: SMEM (4,) f32 [a, b, c, d], scalar-prefetched once.
    a = coef_ref[0]
    b = coef_ref[1]
    c = coef_ref[2]
    d = coef_ref[3]
    x = x_ref[...].astype(jnp.float32)
    # Horner form: 3 mul + 3 add per element, single live temp; cast once on store.
    y = ((d * x + c) * x + b) * x + a
    o_ref[...] = y.astype(o_ref.dtype)


def _poly_jnp(x, a, b, c, d):
    xf = x.astype(jnp.float32)
    return (((d * xf + c) * xf + b) * xf + a).astype(x.dtype)


def toy_model_forward(x, a, b, c, d, *, min_pallas_elems=_SMALL_INPUT_ELEMS):
    """y = a + b*x + c*x**2 + d*x**3, elementwise over x (any shape)."""
    orig_shape = x.shape
    orig_dtype = x.dtype
    n = x.size

    # Small-input fast path: Pallas launch + wrapper plumbing dominates below
    # ~1M elements; XLA's fused elementwise path is as fast or faster there.
    if n == 0 or n < min_pallas_elems:
        return _poly_jnp(x, a, b, c, d)

    itemsize = jnp.dtype(orig_dtype).itemsize
    sub = {1: 32, 2: 16}.get(itemsize, 8)     # dtype-aware sublane alignment

    flat = x.reshape(-1)
    if n % _LANE == 0:
        # Exact-fit path: free reshape to a lane-dense slab, no pad / slice pass.
        rows = n // _LANE
        x2d = flat.reshape(rows, _LANE)
        needs_slice = False
    else:
        # Ragged fallback: pad the flat view to a sublane-aligned row count.
        # Costs one extra HBM pass in and one out; large inputs rarely hit it,
        # small ragged inputs are absorbed by the jnp fast path above.
        rows = _round_up(pl.cdiv(n, _LANE), sub)
        flat = jnp.pad(flat, (0, rows * _LANE - n))
        x2d = flat.reshape(rows, _LANE)
        needs_slice = True

    # Block sizing: up to ~4 MiB of input per block (amortizes the ~0.35 us
    # per-step overhead toward the 85-86% HBM-roofline plateau), but keep at
    # least _MIN_BLOCKS programs so the "parallel" grid axis can be sharded
    # across both v7x TensorCores.
    cap_rows = max(sub, (_TARGET_BLOCK_BYTES // (_LANE * itemsize)) // sub * sub)
    want_rows = _round_up(pl.cdiv(rows, _MIN_BLOCKS), sub)
    tile_r = min(cap_rows, want_rows)
    if tile_r >= rows:
        tile_r = rows            # single full-extent block (always a legal shape)
    grid = (pl.cdiv(rows, tile_r),)

    coefs = jnp.stack([a, b, c, d]).astype(jnp.float32)

    y2d = pl.pallas_call(
        _poly_kernel,
        out_shape=jax.ShapeDtypeStruct((rows, _LANE), orig_dtype),
        grid_spec=pltpu.PrefetchScalarGridSpec(
            num_scalar_prefetch=1,
            grid=grid,
            in_specs=[
                pl.BlockSpec((tile_r, _LANE), lambda i, _coef: (i, 0)),
            ],
            out_specs=pl.BlockSpec((tile_r, _LANE), lambda i, _coef: (i, 0)),
        ),
        compiler_params=pltpu.CompilerParams(
            dimension_semantics=("parallel",),
            vmem_limit_bytes=_VMEM_LIMIT_BYTES,
        ),
    )(coefs, x2d)

    if needs_slice:
        return y2d.reshape(-1)[:n].reshape(orig_shape)
    return y2d.reshape(orig_shape)


if __name__ == "__main__":
    key = jax.random.PRNGKey(0)
    kx, ka, kb, kc, kd = jax.random.split(key, 5)

    # Deterministic "torch.randn(())" equivalents for the four scalar params.
    a = jax.random.normal(ka, (), dtype=jnp.float32)
    b = jax.random.normal(kb, (), dtype=jnp.float32)
    c = jax.random.normal(kc, (), dtype=jnp.float32)
    d = jax.random.normal(kd, (), dtype=jnp.float32)

    # Small NCHW input consistent with an image-style forward.
    x = jax.random.normal(kx, (2, 4, 16, 16), dtype=jnp.float32)

    def ref(v):
        return a + b * v + c * v**2 + d * v**3

    # 1) Default path (small input -> fused jnp fast path).
    y = jax.block_until_ready(toy_model_forward(x, a, b, c, d))
    assert y.shape == x.shape
    assert jnp.allclose(y, ref(x), atol=1e-5, rtol=1e-5)

    # 2) Force the Pallas kernel (exact-fit lane-dense path, grid of 2 blocks).
    y_k = jax.block_until_ready(
        toy_model_forward(x, a, b, c, d, min_pallas_elems=0))
    assert y_k.shape == x.shape
    assert jnp.allclose(y_k, ref(x), atol=1e-5, rtol=1e-5)

    # 3) Force the Pallas kernel on a ragged shape (exercises the pad path).
    x_rag = jax.random.normal(kx, (3, 5, 7), dtype=jnp.float32)
    y_rag = jax.block_until_ready(
        toy_model_forward(x_rag, a, b, c, d, min_pallas_elems=0))
    assert y_rag.shape == x_rag.shape
    assert jnp.allclose(y_rag, ref(x_rag), atol=1e-5, rtol=1e-5)

    print("KERNEL_OK")
</pallas_src>

<mosaic_0001>
module attributes {stable_mosaic.version = 11 : i64} {
  func.func @_poly_kernel(%arg0: i32, %arg1: memref<4xf32, #tpu.memory_space<smem>>, %arg2: memref<8x128xf32, #tpu.memory_space<vmem>>, %arg3: memref<8x128xf32, #tpu.memory_space<vmem>>) attributes {dimension_semantics = [#tpu.dimension_semantics<parallel>], iteration_bounds = array<i64: 2>, scalar_prefetch = 1 : i64, scratch_operands = 0 : i64, tpu.core_type = #tpu.core_type<tc>, window_params = [{transform_indices = @transform_0, window_bounds = array<i64: 8, 128>}, {transform_indices = @transform_1, window_bounds = array<i64: 8, 128>}]} {
    %c0 = arith.constant 0 : index
    %0 = memref.load %arg1[%c0] : memref<4xf32, #tpu.memory_space<smem>>
    %c1 = arith.constant 1 : index
    %1 = memref.load %arg1[%c1] : memref<4xf32, #tpu.memory_space<smem>>
    %c2 = arith.constant 2 : index
    %2 = memref.load %arg1[%c2] : memref<4xf32, #tpu.memory_space<smem>>
    %c3 = arith.constant 3 : index
    %3 = memref.load %arg1[%c3] : memref<4xf32, #tpu.memory_space<smem>>
    %c0_0 = arith.constant 0 : index
    %c0_1 = arith.constant 0 : index
    %4 = vector.load %arg2[%c0_0, %c0_1] : memref<8x128xf32, #tpu.memory_space<vmem>>, vector<8x128xf32>
    %5 = vector.broadcast %3 : f32 to vector<8x128xf32>
    %6 = arith.mulf %5, %4 : vector<8x128xf32>
    %7 = vector.broadcast %2 : f32 to vector<8x128xf32>
    %8 = arith.addf %6, %7 : vector<8x128xf32>
    %9 = arith.mulf %8, %4 : vector<8x128xf32>
    %10 = vector.broadcast %1 : f32 to vector<8x128xf32>
    %11 = arith.addf %9, %10 : vector<8x128xf32>
    %12 = arith.mulf %11, %4 : vector<8x128xf32>
    %13 = vector.broadcast %0 : f32 to vector<8x128xf32>
    %14 = arith.addf %12, %13 : vector<8x128xf32>
    %c0_2 = arith.constant 0 : index
    %c0_3 = arith.constant 0 : index
    %15 = vector.load %arg3[%c0_2, %c0_3] : memref<8x128xf32, #tpu.memory_space<vmem>>, vector<8x128xf32>
    tpu.vector_store %arg3[%c0_2, %c0_3], %14 {strides = array<i32>} : memref<8x128xf32, #tpu.memory_space<vmem>>, vector<8x128xf32>,
    return
  }
  func.func @transform_0(%arg0: i32, %arg1: memref<4xf32, #tpu.memory_space<smem>>) -> (i32, i32) {
    %c0_i32 = arith.constant 0 : i32
    %c0_i32_0 = arith.constant 0 : i32
    return %arg0, %c0_i32 : i32, i32
  }
  func.func @transform_1(%arg0: i32, %arg1: memref<4xf32, #tpu.memory_space<smem>>) -> (i32, i32) {
    %c0_i32 = arith.constant 0 : i32
    %c0_i32_0 = arith.constant 0 : i32
    return %arg0, %c0_i32 : i32, i32
  }
}

</mosaic_0001>

<bundles_post_ra>
// kernel: tpu_custom_call.1
= control target key start
LH: loop header
LB: loop body
LE: loop exit
PB: predicated region body
PF: predicated region fallthrough
CT: control target
= control target key end

     0   :  { %s419_s12 = smov [#allocation3]   ;;  %s565_s0 = inlined_call_operand.hbm [shape: f32[4], index: 0, kind: input, shape index: {}]   ;;  %s566_s1 = inlined_call_operand.hbm [shape: f32[16,128], index: 1, kind: input, shape index: {}]   ;;  %s567_s2 = inlined_call_operand.hbm [shape: f32[16,128], index: 2, kind: output, shape index: {}]  }
   0x1   :  { %s8_s11 = sshll.u32 %s565_s0, 4  ;;  %s9_s11 = int_to_ptr.hbm [resolvable:$true] %s8_s11 }
   0x2   :  { %11 = dma.hbm_to_smem %s9_s11, 16, %s419_s12, [#allocation2] }
   0x3   :  { %393 = dma.done.wait [#allocation2], 16 }
   0x4   :  { %394 = vsyncadd [#allocation2], 4294967280 }
   0x5   :  { %14 = sfence }
   0x6   :  { %15 = vsyncpa [#allocation5], 0 }
   0x7   :  { %17 = vsyncpa [#allocation5 + $0x1], 0 }
   0x8   :  { %18 = vsyncpa [#allocation6], 0 }
   0x9   :  { %20 = vsyncpa [#allocation6 + $0x1], 0  ;;  %s438_s13 = smov 0   ;;  %s440_s14 = smov 0  }
   0xa   :  { %s442_s15 = smov 0   ;;  %s444_s16 = smov 0  }
   0xb LB: > { %s459_s0 = sadd.s32 4294967295, %s417_s16   ;;  %s245_s17 = sadd.s32 4294967294, %s417_s16   ;;  %s417_s16 = sphi %s444_s16, %s577_s16   ;;  %s413_s15 = sphi %s442_s15, %s576_s15   ;;  %s409_s14 = sphi %s440_s14, %s575_s14   ;;  %s405_s13 = sphi %s438_s13, %s574_s13  }
   0xc   : > { %s463_s18 = sadd.s32 1, %s417_s16   ;;  %s33_s19 = sadd.s32 1, %s413_s15 }
   0xd   : > { %s30_s20 = ssub.s32 %s417_s16, %s463_s18  ;;  %p40_p0 = scmp.ne.s32.totalorder %s413_s15, %s409_s14 }
   0xe   : > { %p31_p1 = scmp.eq.s32.totalorder %s30_s20, 0  ;;  %p41_p2 = scmp.eq.s32.totalorder %s417_s16, 0 }
   0xf   : > { %p46_p3 = scmp.ne.s32.totalorder %s409_s14, %s405_s13  ;;  %p47_p4 = scmp.eq.s32.totalorder %s459_s0, 0 }
  0x10   : > { %s475_s21 = scalar_select %p31_p1, %s413_s15, %s33_s19  }
  0x11   : > { %p477_p5 = por %p41_p2, %p40_p0  ;;  %p481_p6 = por %p47_p4, %p46_p3 }
  0x12   : > { %p70_p7 = scmp.eq.s32.totalorder %s459_s0, 1  ;;  %p76_p8 = scmp.eq.s32.totalorder %s245_s17, 1 }
  0x13   : > { %p272_p10 = scmp.lt.s32.totalorder %s417_s16, 2  ;;  %s96_s26 = sand.u32 1, %s413_s15  }
  0x14   : > { %p488_p11 = por %p70_p7, %p40_p0  ;;  %p492_p12 = por %p76_p8, %p46_p3 }
  0x15   : > { %s249_s27 = sshll.u32 %s417_s16, 3  ;;  %s248_s28 = sshll.u32 %s96_s26, 3 }
  0x16   : > { %s104_s3 = scalar_lea.hbm %s566_s1, %s249_s27  ;;  %s100_s5 = scalar_lea.vmem [#allocation4], %s248_s28 }
  0x17   : > { %s106_s4 = sshll.u32 %s104_s3, 4  ;;  %s108_s6 = sshll.u32 %s100_s5, 4  ;;  %s107_s4 = int_to_ptr.hbm [resolvable:$true] %s106_s4  ;;  %s109_s6 = int_to_ptr.vmem [resolvable:$true] %s108_s6 }
  0x18   : > { %p503_p13 = pnand %p272_p10, %p477_p5  ;;  %p250_p0 = scmp.ge.s32.totalorder %s417_s16, 1 }
  0x19   : > { %p113_p1 = scmp.lt.s32.totalorder %s417_s16, 3  ;;  %s97_s8 = scalar_lea.sflag [#allocation5], %s96_s26 }
  0x1a   : > { %s319_s9 = sshra.s32 %s107_s4, 4  ;;  %p323_p3 = pneg %p503_p13  ;;  %s320_s9 = int_to_ptr.hbm [resolvable:$true] %s319_s9 }
  0x1b   : > { %s321_s10 = scalar_lea.hbm %s320_s9, 8  ;;  %s326_s17 = scalar_lea.hbm %s566_s1, 16 }
  0x1c   : > { %p322_p2 = scmp.ne.s32.totalorder %s320_s9, %s321_s10  ;;  %p327_p5 = scmp.lt.s32.totalorder %s320_s9, %s566_s1 }
  0x1d   : > { %p328_p8 = scmp.lt.s32.totalorder %s326_s17, %s321_s10 }
  0x1e   : > { %p324_p4 = pnand %p323_p3, %p322_p2 }
  0x1f   : > { %p329_p10 = por %p328_p8, %p327_p5 }
  0x20   : > { %p325_p7 = pneg %p324_p4 }
  0x22   : > { %p330_p9 = pnand %p329_p10, %p325_p7 }
  0x24   : > { %333 = shalt.err (!%p330_p9)
}
  0x25   : > { %267 = dma.hbm_to_vmem [thread:$0]  (!%p503_p13), %s107_s4, 128, %s109_s6, %s97_s8  }
  0x26   : > { %p114_p2 = pnand %p250_p0, %p113_p1 }
  0x27   : > { %s524_s22 = sand.u32 (!%p114_p2), 1, %s409_s14  }
  0x28   : > { %117 = sbr.rel (%p114_p2) target bundleno = 69 (0x45), region = 24  ;;  %s251_s26 = sshll.u32 (!%p114_p2), %s524_s22, 3 }
  0x29   : > { %s120_s27 = scalar_lea.sflag (!%p114_p2), [#allocation5], %s524_s22  ;;  %s123_s28 = scalar_lea.vmem (!%p114_p2), [#allocation4], %s251_s26 }
  0x2d   : > { %396 = dma.done.wait (%p481_p6), %s120_s27, 128  }
  0x2e   : > { %398 = vsyncadd (%p481_p6), %s120_s27, 4294967168  ;;  %s254_s29 = sld [smem:[#allocation3 + $0x2]]  ;;  %v147_v0 = vld [vmem:[%s123_s28] sm:$0xff]  ;;  %s257_s5 = sshll.u32 %s459_s0, 3 }
  0x2f   : > { %s255_s30 = sld [smem:[#allocation3 + $0x3]]  ;;  %s170_s8 = scalar_lea.hbm %s567_s2, %s257_s5 }
  0x30   : > { %s253_s3 = sld [smem:[#allocation3 + $0x1]]  ;;  %s142_s23 = scalar_lea.vmem [#allocation7], %s251_s26 }
  0x31   : > { %s143_s4 = sld [smem:[#allocation3]]  ;;  %s172_s9 = sshll.u32 %s142_s23, 4  ;;  %s173_s9 = int_to_ptr.vmem [resolvable:$true] %s172_s9 }
  0x32   : > { %s174_s10 = sshll.u32 %s170_s8, 4  ;;  %s160_s11 = scalar_lea.sflag [#allocation6], %s524_s22  ;;  %s175_s10 = int_to_ptr.hbm [resolvable:$true] %s174_s10 }
  0x33   : > { %s363_s0 = sshra.s32 %s175_s10, 4  ;;  %s369_s20 = scalar_lea.hbm %s567_s2, 16  ;;  %s364_s0 = int_to_ptr.hbm [resolvable:$true] %s363_s0 }
  0x34   : > { %v150_v2 = vstv %s254_s29  ;;  %s365_s12 = scalar_lea.hbm %s364_s0, 8  ;;  %p370_p0 = scmp.lt.s32.totalorder %s364_s0, %s567_s2 }
  0x35   : > { %v148_v1 = vstv %s255_s30  ;;  %p366_p6 = scmp.ne.s32.totalorder %s364_s0, %s365_s12  ;;  %p371_p1 = scmp.lt.s32.totalorder %s369_s20, %s365_s12 }
  0x36   : > { %v149_v3 = vmul.f32 %v148_v1, %v147_v0  ;;  %v153_v5 = vstv %s253_s3 }
  0x37   : > { %v156_v8 = vstv %s143_s4  ;;  %p367_p9 = pnand %p366_p6, %p488_p11  ;;  %p372_p3 = por %p371_p1, %p370_p0 }
  0x38   : > { %v151_v4 = vadd.f32 %v150_v2, %v149_v3 }
  0x39   : > { %p368_p13 = pneg %p367_p9 }
  0x3a   : > { %v152_v6 = vmul.f32 %v151_v4, %v147_v0 }
  0x3b   : > { %p373_p4 = pnand %p372_p3, %p368_p13 }
  0x3c   : > { %v154_v7 = vadd.f32 %v153_v5, %v152_v6 }
  0x3e   : > { %v155_v9 = vmul.f32 %v154_v7, %v147_v0 }
  0x40   : > { %v157_v10 = vadd.f32 %v156_v8, %v155_v9 }
  0x42   : > { %158 = vst [vmem:[%s142_s23] sm:$0xff] %v157_v10 }
  0x43   : > { %376 = shalt.err (!%p373_p4)
}
  0x44   : > { %262 = dma.vmem_to_hbm [thread:$0]  (%p488_p11), %s173_s9, 128, %s175_s10, %s160_s11  }
  0x45 PF: > { %s186_s22 = sand.u32 1, %s405_s13   ;;  %p573_p7 = scmp.ge.s32.totalorder %s417_s16, 2 }
  0x46   : > { %s187_s28 = scalar_lea.sflag [#allocation6], %s186_s22 }
  0x47   : > { %p269_p5 = pnand %p573_p7, %p492_p12 }
  0x49   : > { %p270_p8 = pneg %p269_p5 }
  0x4b   : > { %400 = dma.done.wait (%p270_p8), %s187_s28, 128  }
  0x4c   : > { %402 = vsyncadd (%p270_p8), %s187_s28, 4294967168  ;;  %p23_p10 = scmp.ge.s32.totalorder %s463_s18, 4   ;;  %s574_s13 = smov %s409_s14 }
  0x4d   : > { %s575_s14 = smov %s413_s15  ;;  %s576_s15 = smov %s475_s21 }
  0x4e   : > { %s577_s16 = smov %s463_s18  ;;  %25 = sbr.rel (!%p23_p10) target bundleno = 11 (0xb), region = 69 }
  0x53   :  { %193 = vsyncpa [#allocation5], 1 }
  0x54   :  { %195 = vsyncpa [#allocation5 + $0x1], 1 }
  0x55   :  { %196 = vsyncpa [#allocation6], 1 }
  0x56   :  { %198 = vsyncpa [#allocation6 + $0x1], 1 }

</bundles_post_ra>
